<compile_context>
chip_gen: v5e
topology: v5e:2x2
jax: 0.10.0
libtpu: 0.0.40
codegen_flags: <defaults>
</compile_context>

<pallas_src>
import math
import functools

import jax
import jax.numpy as jnp
from jax.experimental import pallas as pl
from jax.experimental.pallas import tpu as pltpu


def _bert_embedding_kernel(ids_ref, seed_ref,            # scalar prefetch (SMEM)
                           seg_ids_ref, tok_hbm_ref,     # inputs
                           seg_tab_ref, pe_ref,
                           out_ref,                      # output
                           tok_buf, dma_sem,             # scratch
                           *, tile_tokens, dropout_p, train):
    T = tile_tokens
    E = out_ref.shape[1]
    i = pl.program_id(0)
    base = i * T                                   # first flattened-token index of tile

    # 1) Issue all token-row gather DMAs (HBM -> VMEM scratch); all in flight.
    @pl.loop(0, T)
    def _issue(t):
        tok_id = ids_ref[base + t]
        pltpu.make_async_copy(tok_hbm_ref.at[tok_id], tok_buf.at[t],
                              dma_sem.at[0]).start()

    # 2) Wait for all of them (same-shaped descriptors on the shared semaphore).
    @pl.loop(0, T)
    def _wait(t):
        pltpu.make_async_copy(tok_hbm_ref.at[0], tok_buf.at[t],
                              dma_sem.at[0]).wait()

    # 3) Segment embedding via VPU selects over the 3-row table (ids in {0,1,2}).
    seg_ids = seg_ids_ref[...]                     # (T, 1) int32
    row0 = seg_tab_ref[0:1, :]
    row1 = seg_tab_ref[1:2, :]
    row2 = seg_tab_ref[2:3, :]
    seg_emb = jnp.where(seg_ids == 1, row1,
                        jnp.where(seg_ids == 2, row2, row0))   # (T, E)

    # 4) Sum token + segment + positional embeddings for this tile.
    x = tok_buf[...] + seg_emb + pe_ref[...]

    # 5) Inverted dropout (compiled only when train=True).
    if train and dropout_p > 0.0:
        keep_prob = 1.0 - dropout_p
        pltpu.prng_seed(seed_ref[0] + i)           # mix tile index -> unique mask/tile
        bits = pltpu.bitcast(pltpu.prng_random_bits((T, E)), jnp.uint32)
        thresh = jnp.uint32(int(keep_prob * float(2**32 - 1)))
        x = jnp.where(bits < thresh, x * (1.0 / keep_prob), 0.0)
    # Eval mode: dropout is the identity, matching nn.Dropout.eval().

    out_ref[...] = x.astype(out_ref.dtype)


def _pick_token_tile(s_pad):
    """Largest multiple-of-8 divisor of s_pad that is <= 256."""
    for cand in range(min(s_pad, 256), 7, -8):
        if s_pad % cand == 0:
            return cand
    return 8


def bert_embedding(sequence, segment_label, tok_table, seg_table, pe,
                   *, dropout_p=0.1, train=False, seed=0):
    """Forward pass of BERTEmbedding via a single Pallas kernel.

    sequence:      (B, S) int32 token ids
    segment_label: (B, S) int32 segment ids in {0, 1, 2}
    tok_table:     (V, E) float32 token embedding table (stays in HBM)
    seg_table:     (3, E) float32 segment embedding table
    pe:            (max_len, E) float32 precomputed positional embeddings
    returns:       (B, S, E) float32
    """
    B, S = sequence.shape
    V, E = tok_table.shape
    max_len = pe.shape[0]
    if S > max_len:
        raise ValueError(f"Sequence length {S} exceeds maximum length {max_len}")

    # Pad the sequence axis to a multiple of 8 so token tiles are sublane-aligned.
    S_pad = ((S + 7) // 8) * 8
    if S_pad != S:
        sequence = jnp.pad(sequence, ((0, 0), (0, S_pad - S)))
        segment_label = jnp.pad(segment_label, ((0, 0), (0, S_pad - S)))
    pe_use = pe
    if S_pad > max_len:
        pe_use = jnp.pad(pe_use, ((0, S_pad - max_len), (0, 0)))
    pe_use = pe_use[:S_pad]                       # exactly S_pad rows (divisible by T)

    N = B * S_pad
    T = _pick_token_tile(S_pad)                   # tokens per grid step
    tiles_per_seq = S_pad // T
    num_tiles = N // T

    ids_flat = sequence.reshape(N).astype(jnp.int32)        # SMEM scalar prefetch
    seg2d = segment_label.reshape(N, 1).astype(jnp.int32)   # (T,1) VMEM blocks
    seed_arr = jnp.array([seed], dtype=jnp.int32)

    kernel = functools.partial(_bert_embedding_kernel,
                               tile_tokens=T, dropout_p=dropout_p, train=train)

    out_flat = pl.pallas_call(
        kernel,
        out_shape=jax.ShapeDtypeStruct((N, E), jnp.float32),
        grid_spec=pltpu.PrefetchScalarGridSpec(
            num_scalar_prefetch=2,                # ids_flat, seed -> SMEM
            grid=(num_tiles,),
            in_specs=[
                pl.BlockSpec((T, 1), lambda i, ids, seed: (i, 0)),      # segment ids
                pl.BlockSpec(memory_space=pl.ANY),                      # token table (HBM)
                pl.BlockSpec((3, E), lambda i, ids, seed: (0, 0)),      # segment table
                pl.BlockSpec((T, E),
                             lambda i, ids, seed: (i % tiles_per_seq, 0)),  # pe tile
            ],
            out_specs=pl.BlockSpec((T, E), lambda i, ids, seed: (i, 0)),
            scratch_shapes=[
                pltpu.VMEM((T, E), jnp.float32),      # gathered token rows
                pltpu.SemaphoreType.DMA((1,)),        # shared gather semaphore
            ],
        ),
        compiler_params=pltpu.CompilerParams(
            dimension_semantics=("parallel",)),
    )(ids_flat, seed_arr, seg2d, tok_table, seg_table, pe_use)

    out = out_flat.reshape(B, S_pad, E)
    if S_pad != S:
        out = out[:, :S, :]
    return out


def make_positional_embedding(d_model, max_len=1024):
    position = jnp.arange(max_len, dtype=jnp.float32)[:, None]
    div_term = jnp.exp(jnp.arange(0, d_model, 2, dtype=jnp.float32)
                       * -(math.log(10000.0) / d_model))
    pe = jnp.zeros((max_len, d_model), jnp.float32)
    pe = pe.at[:, 0::2].set(jnp.sin(position * div_term))
    pe = pe.at[:, 1::2].set(jnp.cos(position * div_term))
    return pe


if __name__ == "__main__":
    B, S = 2, 8
    vocab_size, embed_size, max_len = 256, 128, 1024

    key = jax.random.PRNGKey(0)
    k_tok, k_seg, k_ids, k_lab = jax.random.split(key, 4)

    # Deterministic parameter init matching the PyTorch module:
    # normal(0, 0.02) with row 0 (padding_idx) zeroed.
    tok_table = (0.02 * jax.random.normal(k_tok, (vocab_size, embed_size),
                                          jnp.float32)).at[0].set(0.0)
    seg_table = (0.02 * jax.random.normal(k_seg, (3, embed_size),
                                          jnp.float32)).at[0].set(0.0)
    pe = make_positional_embedding(embed_size, max_len)

    sequence = jax.random.randint(k_ids, (B, S), 0, vocab_size, dtype=jnp.int32)
    segment_label = jax.random.randint(k_lab, (B, S), 0, 3, dtype=jnp.int32)

    out = bert_embedding(sequence, segment_label, tok_table, seg_table, pe,
                         dropout_p=0.1, train=False)
    out = jax.block_until_ready(out)

    # Pure-JAX reference (dropout is identity in eval mode).
    ref = (tok_table[sequence] + seg_table[segment_label]
           + pe[:S][None, :, :])
    assert out.shape == (B, S, embed_size)
    assert jnp.allclose(out, ref, atol=1e-5, rtol=1e-5)

    print("KERNEL_OK")
</pallas_src>

<mosaic_0001>
module attributes {stable_mosaic.version = 11 : i64} {
  func.func @_bert_embedding_kernel(%arg0: i32, %arg1: memref<16xi32, #tpu.memory_space<smem>>, %arg2: memref<1xi32, #tpu.memory_space<smem>>, %arg3: memref<8x1xi32, #tpu.memory_space<vmem>>, %arg4: memref<256x128xf32, #tpu.memory_space<any>>, %arg5: memref<3x128xf32, #tpu.memory_space<vmem>>, %arg6: memref<8x128xf32, #tpu.memory_space<vmem>>, %arg7: memref<8x128xf32, #tpu.memory_space<vmem>>, %arg8: memref<8x128xf32, #tpu.memory_space<vmem>>, %arg9: memref<1x!tpu.dma_semaphore, #tpu.memory_space<semaphore_mem>>) attributes {dimension_semantics = [#tpu.dimension_semantics<parallel>], iteration_bounds = array<i64: 2>, scalar_prefetch = 2 : i64, scratch_operands = 2 : i64, tpu.core_type = #tpu.core_type<tc>, window_params = [{transform_indices = @transform_0, window_bounds = array<i64: 8, 1>}, {}, {pipeline_mode = #tpu.pipeline_mode<synchronous>, transform_indices = @transform_2, window_bounds = array<i64: 3, 128>}, {transform_indices = @transform_3, window_bounds = array<i64: 8, 128>}, {transform_indices = @transform_4, window_bounds = array<i64: 8, 128>}]} {
    %c8_i32 = arith.constant 8 : i32
    %0 = arith.muli %arg0, %c8_i32 : i32
    %c0_i32 = arith.constant 0 : i32
    %c8_i32_0 = arith.constant 8 : i32
    %1 = arith.addi %c0_i32, %c8_i32_0 : i32
    %c1_i32 = arith.constant 1 : i32
    scf.for %arg10 = %c0_i32 to %1 step %c1_i32  : i32 {
      %c1_i32_18 = arith.constant 1 : i32
      %28 = arith.muli %arg10, %c1_i32_18 : i32
      %c0_i32_19 = arith.constant 0 : i32
      %29 = arith.addi %c0_i32_19, %28 : i32
      %30 = arith.addi %0, %29 : i32
      %31 = arith.index_cast %30 : i32 to index
      %32 = memref.load %arg1[%31] : memref<16xi32, #tpu.memory_space<smem>>
      %c0_i32_20 = arith.constant 0 : i32
      %c0_i32_21 = arith.constant 0 : i32
      %33 = tpu.memref_slice %arg4[%32, %c0_i32_21] : memref<256x128xf32, #tpu.memory_space<any>> -> memref<1x128xf32, #tpu.memory_space<any>>
      %34 = tpu.memref_squeeze %33 : memref<1x128xf32, #tpu.memory_space<any>> -> memref<128xf32, #tpu.memory_space<any>>
      %c0_i32_22 = arith.constant 0 : i32
      %35 = tpu.memref_slice %arg8[%29, %c0_i32_22] : memref<8x128xf32, #tpu.memory_space<vmem>> -> memref<1x128xf32, #tpu.memory_space<vmem>>
      %36 = tpu.memref_squeeze %35 : memref<1x128xf32, #tpu.memory_space<vmem>> -> memref<128xf32, #tpu.memory_space<vmem>>
      %37 = tpu.memref_slice %arg9[%c0_i32_20] : memref<1x!tpu.dma_semaphore, #tpu.memory_space<semaphore_mem>> -> memref<1x!tpu.dma_semaphore, #tpu.memory_space<semaphore_mem>>
      %38 = tpu.memref_squeeze %37 : memref<1x!tpu.dma_semaphore, #tpu.memory_space<semaphore_mem>> -> memref<!tpu.dma_semaphore, #tpu.memory_space<semaphore_mem>>
      tpu.enqueue_dma source(%34 : memref<128xf32, #tpu.memory_space<any>>) target(%36 : memref<128xf32, #tpu.memory_space<vmem>>) target_semaphore(%38 : memref<!tpu.dma_semaphore, #tpu.memory_space<semaphore_mem>>)
    }
    %c8_i32_1 = arith.constant 8 : i32
    %c0_i32_2 = arith.constant 0 : i32
    %c8_i32_3 = arith.constant 8 : i32
    %2 = arith.addi %c0_i32_2, %c8_i32_3 : i32
    %c1_i32_4 = arith.constant 1 : i32
    scf.for %arg10 = %c0_i32_2 to %2 step %c1_i32_4  : i32 {
      %c1_i32_18 = arith.constant 1 : i32
      %28 = arith.muli %arg10, %c1_i32_18 : i32
      %c0_i32_19 = arith.constant 0 : i32
      %29 = arith.addi %c0_i32_19, %28 : i32
      %c0_i32_20 = arith.constant 0 : i32
      %c0_i32_21 = arith.constant 0 : i32
      %c0_i32_22 = arith.constant 0 : i32
      %30 = tpu.memref_slice %arg4[%c0_i32_20, %c0_i32_22] : memref<256x128xf32, #tpu.memory_space<any>> -> memref<1x128xf32, #tpu.memory_space<any>>
      %31 = tpu.memref_squeeze %30 : memref<1x128xf32, #tpu.memory_space<any>> -> memref<128xf32, #tpu.memory_space<any>>
      %c0_i32_23 = arith.constant 0 : i32
      %32 = tpu.memref_slice %arg8[%29, %c0_i32_23] : memref<8x128xf32, #tpu.memory_space<vmem>> -> memref<1x128xf32, #tpu.memory_space<vmem>>
      %33 = tpu.memref_squeeze %32 : memref<1x128xf32, #tpu.memory_space<vmem>> -> memref<128xf32, #tpu.memory_space<vmem>>
      %34 = tpu.memref_slice %arg9[%c0_i32_21] : memref<1x!tpu.dma_semaphore, #tpu.memory_space<semaphore_mem>> -> memref<1x!tpu.dma_semaphore, #tpu.memory_space<semaphore_mem>>
      %35 = tpu.memref_squeeze %34 : memref<1x!tpu.dma_semaphore, #tpu.memory_space<semaphore_mem>> -> memref<!tpu.dma_semaphore, #tpu.memory_space<semaphore_mem>>
      tpu.wait_dma2 semaphore(%35 : memref<!tpu.dma_semaphore, #tpu.memory_space<semaphore_mem>>) src(%31 : memref<128xf32, #tpu.memory_space<any>>) dst(%33 : memref<128xf32, #tpu.memory_space<vmem>>)
    }
    %c8_i32_5 = arith.constant 8 : i32
    %c0 = arith.constant 0 : index
    %c0_6 = arith.constant 0 : index
    %3 = vector.load %arg3[%c0, %c0_6] : memref<8x1xi32, #tpu.memory_space<vmem>>, vector<8x1xi32>
    %c0_7 = arith.constant 0 : index
    %c0_8 = arith.constant 0 : index
    %4 = vector.load %arg5[%c0_7, %c0_8] : memref<3x128xf32, #tpu.memory_space<vmem>>, vector<1x128xf32>
    %c1 = arith.constant 1 : index
    %c0_9 = arith.constant 0 : index
    %5 = vector.load %arg5[%c1, %c0_9] : memref<3x128xf32, #tpu.memory_space<vmem>>, vector<1x128xf32>
    %c2 = arith.constant 2 : index
    %c0_10 = arith.constant 0 : index
    %6 = vector.load %arg5[%c2, %c0_10] : memref<3x128xf32, #tpu.memory_space<vmem>>, vector<1x128xf32>
    %c1_i32_11 = arith.constant 1 : i32
    %7 = vector.broadcast %c1_i32_11 : i32 to vector<8x1xi32>
    %8 = arith.cmpi eq, %3, %7 : vector<8x1xi32>
    %c2_i32 = arith.constant 2 : i32
    %9 = vector.broadcast %c2_i32 : i32 to vector<8x1xi32>
    %10 = arith.cmpi eq, %3, %9 : vector<8x1xi32>
    %11 = vector.shape_cast %10 : vector<8x1xi1> to vector<8x1xi1>
    %12 = vector.broadcast %11 : vector<8x1xi1> to vector<8x128xi1>
    %13 = vector.shape_cast %6 : vector<1x128xf32> to vector<1x128xf32>
    %14 = vector.broadcast %13 : vector<1x128xf32> to vector<8x128xf32>
    %15 = vector.shape_cast %4 : vector<1x128xf32> to vector<1x128xf32>
    %16 = vector.broadcast %15 : vector<1x128xf32> to vector<8x128xf32>
    %17 = arith.select %12, %14, %16 : vector<8x128xi1>, vector<8x128xf32>
    %18 = vector.shape_cast %8 : vector<8x1xi1> to vector<8x1xi1>
    %19 = vector.broadcast %18 : vector<8x1xi1> to vector<8x128xi1>
    %20 = vector.shape_cast %5 : vector<1x128xf32> to vector<1x128xf32>
    %21 = vector.broadcast %20 : vector<1x128xf32> to vector<8x128xf32>
    %22 = arith.select %19, %21, %17 : vector<8x128xi1>, vector<8x128xf32>
    %c0_12 = arith.constant 0 : index
    %c0_13 = arith.constant 0 : index
    %23 = vector.load %arg8[%c0_12, %c0_13] : memref<8x128xf32, #tpu.memory_space<vmem>>, vector<8x128xf32>
    %24 = arith.addf %23, %22 : vector<8x128xf32>
    %c0_14 = arith.constant 0 : index
    %c0_15 = arith.constant 0 : index
    %25 = vector.load %arg6[%c0_14, %c0_15] : memref<8x128xf32, #tpu.memory_space<vmem>>, vector<8x128xf32>
    %26 = arith.addf %24, %25 : vector<8x128xf32>
    %c0_16 = arith.constant 0 : index
    %c0_17 = arith.constant 0 : index
    %27 = vector.load %arg7[%c0_16, %c0_17] : memref<8x128xf32, #tpu.memory_space<vmem>>, vector<8x128xf32>
    tpu.vector_store %arg7[%c0_16, %c0_17], %26 {strides = array<i32>} : memref<8x128xf32, #tpu.memory_space<vmem>>, vector<8x128xf32>,
    return
  }
  func.func @transform_0(%arg0: i32, %arg1: memref<16xi32, #tpu.memory_space<smem>>, %arg2: memref<1xi32, #tpu.memory_space<smem>>) -> (i32, i32) {
    %c0_i32 = arith.constant 0 : i32
    %c0_i32_0 = arith.constant 0 : i32
    return %arg0, %c0_i32 : i32, i32
  }
  func.func @transform_2(%arg0: i32, %arg1: memref<16xi32, #tpu.memory_space<smem>>, %arg2: memref<1xi32, #tpu.memory_space<smem>>) -> (i32, i32) {
    %c0_i32 = arith.constant 0 : i32
    %c0_i32_0 = arith.constant 0 : i32
    %c0_i32_1 = arith.constant 0 : i32
    return %c0_i32, %c0_i32_0 : i32, i32
  }
  func.func @transform_3(%arg0: i32, %arg1: memref<16xi32, #tpu.memory_space<smem>>, %arg2: memref<1xi32, #tpu.memory_space<smem>>) -> (i32, i32) {
    %c1_i32 = arith.constant 1 : i32
    %c0_i32 = arith.constant 0 : i32
    %0 = arith.cmpi eq, %c1_i32, %c0_i32 : i32
    %c1_i32_0 = arith.constant 1 : i32
    %1 = arith.select %0, %c1_i32_0, %c1_i32 : i32
    %2 = arith.remsi %arg0, %1 : i32
    %c0_i32_1 = arith.constant 0 : i32
    %3 = arith.cmpi ne, %2, %c0_i32_1 : i32
    %c0_i32_2 = arith.constant 0 : i32
    %4 = arith.cmpi slt, %2, %c0_i32_2 : i32
    %c0_i32_3 = arith.constant 0 : i32
    %5 = arith.cmpi slt, %1, %c0_i32_3 : i32
    %6 = arith.xori %4, %5 : i1
    %7 = arith.andi %6, %3 : i1
    %8 = arith.addi %2, %1 : i32
    %9 = arith.select %7, %8, %2 : i32
    %c0_i32_4 = arith.constant 0 : i32
    %c0_i32_5 = arith.constant 0 : i32
    return %9, %c0_i32_4 : i32, i32
  }
  func.func @transform_4(%arg0: i32, %arg1: memref<16xi32, #tpu.memory_space<smem>>, %arg2: memref<1xi32, #tpu.memory_space<smem>>) -> (i32, i32) {
    %c0_i32 = arith.constant 0 : i32
    %c0_i32_0 = arith.constant 0 : i32
    return %arg0, %c0_i32 : i32, i32
  }
}

</mosaic_0001>

<bundles_post_ra>
// kernel: tpu_custom_call.1
= control target key start
LH: loop header
LB: loop body
LE: loop exit
PB: predicated region body
PF: predicated region fallthrough
CT: control target
= control target key end

     0   :  { %s522_s1 = smov [#allocation5]   ;;  %s697_s0 = inlined_call_operand.vmem [shape: s32[16], index: 0, kind: input, shape index: {}]   ;;  %s698_s1 = inlined_call_operand.<no memory space> [shape: s32[1], index: 1, kind: input, shape index: {}]   ;;  %s699_s2 = inlined_call_operand.vmem [shape: s32[16,1], index: 2, kind: input, shape index: {}]   ;;  %s700_s3 = inlined_call_operand.hbm [shape: f32[256,128], index: 3, kind: input, shape index: {}]   ;;  %s701_s4 = inlined_call_operand.vmem [shape: f32[3,128], index: 4, kind: input, shape index: {}]   ;;  %s702_s5 = inlined_call_operand.vmem [shape: f32[8,128], index: 5, kind: input, shape index: {}]   ;;  %s703_s6 = inlined_call_operand.hbm [shape: f32[16,128], index: 6, kind: output, shape index: {}]  }
   0x1   :  { %705 = sst [smem:[#allocation16_spill]] %s699_s2  ;;  %s12_s23 = sshll.u32 %s697_s0, 4  ;;  %s13_s23 = int_to_ptr.vmem [resolvable:$true] %s12_s23 }
   0x2   :  { %15 = dma.vmem_to_smem %s13_s23, 16, %s522_s1, [#allocation4] }
   0x3   :  { %490 = dma.done.wait [#allocation4], 16 }
   0x4   :  { %491 = vsyncadd [#allocation4], 4294967280 }
   0x5   :  { %19 = sfence }
   0x6   :  { %20 = vsyncpa [#allocation8], 0 }
   0x7   :  { %22 = vsyncpa [#allocation8 + $0x1], 0  ;;  %s563_s24 = smov 0   ;;  %s565_s25 = smov 0  }
   0x8   :  { %s567_s26 = smov 0   ;;  %s569_s27 = smov 0  }
   0x9 LB: > { %s584_s0 = sadd.s32 4294967295, %s512_s27   ;;  %s329_s28 = sadd.s32 4294967294, %s512_s27   ;;  %s512_s27 = sphi %s569_s27, %s717_s27   ;;  %s508_s26 = sphi %s567_s26, %s716_s26   ;;  %s504_s25 = sphi %s565_s25, %s715_s25   ;;  %s500_s24 = sphi %s563_s24, %s714_s24  }
   0xa   : > { %s588_s29 = sadd.s32 1, %s512_s27   ;;  %s103_s30 = sadd.s32 1, %s508_s26 }
   0xb   : > { %s100_s7 = ssub.s32 %s512_s27, %s588_s29  ;;  %p113_p0 = scmp.ne.s32.totalorder %s508_s26, %s504_s25 }
   0xc   : > { %p101_p1 = scmp.eq.s32.totalorder %s100_s7, 0  ;;  %p114_p2 = scmp.eq.s32.totalorder %s584_s0, 1 }
   0xd   : > { %p119_p3 = scmp.ne.s32.totalorder %s504_s25, %s500_s24  ;;  %p120_p4 = scmp.eq.s32.totalorder %s329_s28, 1 }
   0xe   : > { %s599_s8 = scalar_select %p101_p1, %s508_s26, %s103_s30  }
   0xf   : > { %p601_p5 = por %p114_p2, %p113_p0  ;;  %p605_p6 = por %p120_p4, %p119_p3 }
  0x10   : > { %p332_p7 = scmp.ge.s32.totalorder %s512_s27, 1  ;;  %p151_p8 = scmp.lt.s32.totalorder %s512_s27, 3 }
  0x12   : > { %p152_p9 = pnand %p332_p7, %p151_p8 }
  0x13   : > { %s704_s11 = sand.u32 (!%p152_p9), 1, %s504_s25   ;;  %p174_p10 = scmp.lt.s32.totalorder (!%p152_p9), %s584_s0, 1 }
  0x14   : > { %155 = sbr.rel (%p152_p9) target bundleno = 205 (0xcd), region = 32  ;;  %s615_s12 = sshll.u32 (!%p152_p9), %s704_s11, 3 }
  0x15   : > { %s708_s2 = sld [smem:[#allocation16_spill]] (!%p152_p9)  ;;  %s625_s20 = smov (!%p152_p9), 0  }
  0x19   : > { %s175_s14 = scalar_select %p174_p10, %s584_s0, 1 }
  0x1b   : > { %s334_s15 = sshll.u32 %s175_s14, 3 }
  0x1c   : > { %s622_s18 = scalar_lea.vmem %s708_s2, %s334_s15 }
  0x1d LB: >> { %s709_s13 = sshll.u32 %s584_s0, 3  ;;  %s188_s23 = scalar_lea.vmem [#allocation2], %s516_s20  ;;  %s516_s20 = sphi %s625_s20, %s184_s20  }
  0x1e   : >> { %s185_s21 = sadd.s32 %s516_s20, %s709_s13  ;;  %s198_s1 = sshll.u32 %s188_s23, 4  ;;  %s199_s1 = int_to_ptr.vmem [resolvable:$true] %s198_s1 }
  0x1f   : >> { %s186_s22 = sld [smem:[#allocation5 + %s185_s21]]  ;;  %s418_s19 = scalar_lea.hbm %s700_s3, 256 }
  0x25   : >> { %s187_s7 = scalar_lea.hbm %s700_s3, %s186_s22 }
  0x26   : >> { %s196_s14 = sshll.u32 %s187_s7, 4  ;;  %s197_s14 = int_to_ptr.hbm [resolvable:$true] %s196_s14 }
  0x27   : >> { %s414_s15 = sshra.s32 %s197_s14, 4  ;;  %s415_s15 = int_to_ptr.hbm [resolvable:$true] %s414_s15 }
  0x28   : >> { %s416_s16 = scalar_lea.hbm %s415_s15, 1  ;;  %p419_p12 = scmp.lt.s32.totalorder %s415_s15, %s700_s3 }
  0x29   : >> { %p417_p11 = scmp.ne.s32.totalorder %s415_s15, %s416_s16  ;;  %p420_p13 = scmp.lt.s32.totalorder %s418_s19, %s416_s16 }
  0x2b   : >> { %p421_p0 = por %p420_p13, %p419_p12 }
  0x2d   : >> { %p422_p1 = pnand %p421_p0, %p417_p11 }
  0x2f   : >> { %425 = shalt.err (!%p422_p1)  }
  0x30   : >> { %s426_s21 = sshra.s32 %s199_s1, 4  ;;  %s523_s23 = smov [#allocation2]   ;;  %s427_s21 = int_to_ptr.vmem [resolvable:$true] %s426_s21 }
  0x31   : >> { %s428_s22 = scalar_lea.vmem %s427_s21, 1  ;;  %s430_s28 = scalar_lea.vmem %s523_s23, 8 }
  0x32   : >> { %p429_p2 = scmp.ne.s32.totalorder %s427_s21, %s428_s22  ;;  %p431_p3 = scmp.lt.s32.totalorder %s427_s21, [#allocation2] }
  0x33   : >> { %p432_p4 = scmp.lt.s32.totalorder %s430_s28, %s428_s22 }
  0x35   : >> { %p433_p7 = por %p432_p4, %p431_p3 }
  0x37   : >> { %p434_p8 = pnand %p433_p7, %p429_p2 }
  0x39   : >> { %437 = shalt.err (!%p434_p8)  }
  0x3a   : >> { %201 = dma.hbm_to_vmem [thread:$0]  %s197_s14, 16, %s199_s1, [#allocation3] }
  0x3b   : >> { %s184_s20 = sadd.s32 1, %s516_s20  }
  0x3c   : >> { %p181_p9 = scmp.ge.s32.totalorder %s184_s20, 8  }
  0x3d   : > { %s518_s2 = smov (%p181_p9), 0  }
  0x3e   : > { %183 = sbr.rel (!%p181_p9) target bundleno = 29 (0x1d), region = 87 }
  0x43 LB: >> { %492 = dma.done.wait [#allocation3], 16  ;;  %s520_s2 = sphi %s518_s2, %s207_s2  }
  0x44   : >> { %493 = vsyncadd [#allocation3], 4294967280  ;;  %s207_s2 = sadd.s32 1, %s520_s2  }
  0x45   : >> { %p204_p10 = scmp.ge.s32.totalorder %s207_s2, 8  }
  0x46   : > { %v210_v0 = vld [vmem:[%s622_s18] sm:$0xff] (%p204_p10)  ;;  %v524_v1 = vmov (%p204_p10), 0   ;;  %s710_s30 = sshll.u32 (%p204_p10), %s584_s0, 3  ;;  %s711_s21 = scalar_lea.vmem (%p204_p10), [#allocation7], %s615_s12 }
  0x47   : > { %206 = sbr.rel (!%p204_p10) target bundleno = 67 (0x43), region = 98  ;;  %398 = vset.pattern.permute.xlu0 (%p204_p10), %v524_v1  ;;  %vm215_vm0 = vcmp.eq.s32.totalorder (%p204_p10), %v210_v0, 2  ;;  %vm214_vm1 = vcmp.eq.s32.totalorder (%p204_p10), %v210_v0, 1  ;;  %v399_v5 = vld [vmem:[%s701_s4 + $0x2] ss:$0 sm:$0xff] (%p204_p10)  ;;  %s247_s15 = scalar_lea.hbm (%p204_p10), %s703_s6, %s710_s30 }
  0x48   : > { %v216_v2 = vsel (%p204_p10), %vm215_vm0, 1, %v524_v1  ;;  %v224_v3 = vsel (%p204_p10), %vm214_vm1, 1, %v524_v1  ;;  %v400_v6 = vld [vmem:[%s701_s4] ss:$0 sm:$0xff] (%p204_p10)  ;;  %v401_v7 = vld [vmem:[%s701_s4 + $0x1] ss:$0 sm:$0xff] (%p204_p10)  ;;  %s712_s0 = smov (%p204_p10), %s711_s21 }
  0x49   : > { %218 = vperm.xlu0 (%p204_p10), %398, %v216_v2   ;;  %v231_v8 = vld [vmem:[#allocation2] sm:$0xff] (%p204_p10)  ;;  %s249_s22 = sshll.u32 (%p204_p10), %s711_s21, 4  ;;  %s251_s23 = sshll.u32 (%p204_p10), %s247_s15, 4  ;;  %s250_s22 = int_to_ptr.vmem [resolvable:$true] %s249_s22  ;;  %s252_s23 = int_to_ptr.hbm [resolvable:$true] %s251_s23 }
  0x4a   : > { %v233_v12 = vld [vmem:[%s702_s5] sm:$0xff] (%p204_p10)  ;;  %s713_s28 = sand.u32 (%p204_p10), 1, %s504_s25   ;;  %s452_s11 = sshra.s32 (%p204_p10), %s252_s23, 4  ;;  %s453_s11 = int_to_ptr.hbm [resolvable:$true] %s452_s11 }
  0x4b   : > { %s237_s2 = scalar_lea.sflag (%p204_p10), [#allocation8], %s713_s28  ;;  %s454_s13 = scalar_lea.hbm (%p204_p10), %s453_s11, 8 }
  0x4c   : > { %p455_p11 = scmp.ne.s32.totalorder %s453_s11, %s454_s13  ;;  %s458_s18 = scalar_lea.hbm %s703_s6, 16 }
  0x4d   : > { %p459_p0 = scmp.lt.s32.totalorder %s453_s11, %s703_s6  ;;  %p460_p1 = scmp.lt.s32.totalorder %s458_s18, %s454_s13 }
  0x4e   : > { %p456_p12 = pnand %p455_p11, %p601_p5 }
  0x4f   : > { %p461_p2 = por %p460_p1, %p459_p0 }
  0x50   : > { %p457_p13 = pneg %p456_p12 }
  0x51   : > { %226 = vperm.xlu0 %398, %v224_v3  }
  0x52   : > { %p462_p3 = pnand %p461_p2, %p457_p13 }
  0xbb   : > { %v219_v4 = vpop.permute.xlu0 %218 }
  0xbc   : > { %vm220_vm2 = vcmp.eq.s32.totalorder %v219_v4, 1 }
  0xbd   : > { %v223_v10 = vsel %vm220_vm2, %v399_v5, %v400_v6 }
  0xc3   : > { %v227_v9 = vpop.permute.xlu0 %226 }
  0xc4   : > { %vm228_vm3 = vcmp.eq.s32.totalorder %v227_v9, 1 }
  0xc5   : > { %v230_v11 = vsel %vm228_vm3, %v401_v7, %v223_v10 }
  0xc6   : > { %v232_v13 = vadd.f32 %v231_v8, %v230_v11 }
  0xc8   : > { %v234_v14 = vadd.f32 %v233_v12, %v232_v13 }
  0xca   : > { %235 = vst [vmem:[%s712_s0] sm:$0xff] %v234_v14 }
  0xcb   : > { %465 = shalt.err (!%p462_p3)
}
  0xcc   : > { %341 = dma.vmem_to_hbm [thread:$0]  (%p601_p5), %s250_s22, 128, %s252_s23, %s237_s2  }
  0xcd PF: > { %p347_p4 = scmp.ge.s32.totalorder %s512_s27, 2  ;;  %s263_s12 = sand.u32 1, %s500_s24  }
  0xce   : > { %s264_s7 = scalar_lea.sflag [#allocation8], %s263_s12 }
  0xcf   : > { %p344_p7 = pnand %p347_p4, %p605_p6 }
  0xd1   : > { %p345_p8 = pneg %p344_p7 }
  0xd3   : > { %495 = dma.done.wait (%p345_p8), %s264_s7, 128  }
  0xd4   : > { %497 = vsyncadd (%p345_p8), %s264_s7, 4294967168  ;;  %p25_p9 = scmp.ge.s32.totalorder %s588_s29, 4   ;;  %s714_s24 = smov %s504_s25 }
  0xd5   : > { %s715_s25 = smov %s508_s26  ;;  %s716_s26 = smov %s599_s8 }
  0xd6   : > { %s717_s27 = smov %s588_s29  ;;  %27 = sbr.rel (!%p25_p9) target bundleno = 9 (0x9), region = 109 }
  0xdb   :  { %270 = vsyncpa [#allocation8], 1 }
  0xdc   :  { %272 = vsyncpa [#allocation8 + $0x1], 1 }
  0xdd   :  { %273 = vsyncmov [#allocation3] }
  0xe0   :  { %s274_s27 = vpop.sfrf %273 }
  0xe1   :  { %p340_p5 = scmp.ne.s32.totalorder %s274_s27, 0 }
  0xe3   :  { %278 = shalt.err (%p340_p5)  }

</bundles_post_ra>
